<compile_context>
chip_gen: v5e
topology: v5e:2x2
jax: 0.10.0
libtpu: 0.0.40
codegen_flags: <defaults>
</compile_context>

<pallas_src>
import functools

import jax
import jax.numpy as jnp
from jax.experimental import pallas as pl
from jax.experimental.pallas import tpu as pltpu


def _round_up(a, b):
    return (a + b - 1) // b * b


def _conv_tile(src, w_ref, b_ref, o_ref, *, n_taps, dil, base, tt, use_mxu):
    """Compute one output tile.

    src:  Ref view (C_eff, >= base + tt); tap k for output column j reads
          src[c, base - (n_taps-1-k)*dil + j]   (all offsets static).
    w_ref: (C_out, n_taps*C_eff)  fused weight, column index = k*C_eff + c
    b_ref: (C_out, 1) f32 bias
    o_ref: (1, C_out, tt) output block
    """
    C_eff = src.shape[0]
    C_out = o_ref.shape[1]
    f32 = jnp.float32

    # Register-friendly compute chunking of the (possibly large) time tile:
    # keep the f32 accumulator around ~64 KiB regardless of C_out.
    chunk = max(128, ((64 * 1024) // (C_out * 4)) // 128 * 128)

    for off in range(0, tt, chunk):
        cw = min(chunk, tt - off)
        acc = jnp.broadcast_to(b_ref[...].astype(f32), (C_out, cw))
        for k in range(n_taps):
            start = base + off - (n_taps - 1 - k) * dil
            if use_mxu:
                tap = src[:, start:start + cw].astype(f32)        # (C_eff, cw)
                acc = acc + jnp.dot(
                    w_ref[:, k * C_eff:(k + 1) * C_eff].astype(f32), tap,
                    preferred_element_type=f32)
            else:
                # VPU broadcast-FMA: tiny channel counts make the MXU pointless.
                for c in range(C_eff):
                    j = k * C_eff + c
                    row = src[c:c + 1, start:start + cw].astype(f32)   # (1, cw)
                    col = w_ref[:, j:j + 1].astype(f32)                # (C_out, 1)
                    acc = acc + col * row
        o_ref[0, :, off:off + cw] = acc.astype(o_ref.dtype)


def _halo_kernel(x_ref, w_ref, b_ref, o_ref, ext_ref, *,
                 n_taps, dil, head, tt, use_mxu):
    # x_ref:   (1, C_eff, tt)        current time tile of x (untouched NCT input)
    # ext_ref: (C_eff, head + tt)    VMEM scratch: [lane-aligned halo | tile]
    # o_ref:   (1, C_out, tt)        output tile at its true position
    C_eff = x_ref.shape[1]
    pad_eff = (n_taps - 1) * dil
    m = pl.program_id(1)

    # First tile of every batch row: causal zero padding.
    @pl.when(m == 0)
    def _():
        ext_ref[:, :head] = jnp.zeros((C_eff, head), ext_ref.dtype)

    # Place the tile right after the 128-aligned halo head (unmasked store).
    ext_ref[:, head:] = x_ref[0]

    _conv_tile(ext_ref, w_ref, b_ref, o_ref,
               n_taps=n_taps, dil=dil, base=head, tt=tt, use_mxu=use_mxu)

    # Carry the last pad_eff input columns into the halo for the next tile.
    @pl.when(m + 1 < pl.num_programs(1))
    def _():
        ext_ref[:, head - pad_eff:head] = ext_ref[:, head + tt - pad_eff:head + tt]


def _nohalo_kernel(x_ref, w_ref, b_ref, o_ref, *, tt, use_mxu):
    # Pointwise (K==1) or pre-gathered strided path: no halo needed.
    _conv_tile(x_ref.at[0], w_ref, b_ref, o_ref,
               n_taps=1, dil=0, base=0, tt=tt, use_mxu=use_mxu)


def causal_conv1d(x, weight, bias, *, stride=1, dilation=1,
                  time_tile=8192, vmem_block_budget=8 * 1024 * 1024):
    """Causal 1-D convolution.

    x:      (N, C_in, T)      -- PyTorch NCT layout (f32 or bf16)
    weight: (C_out, C_in, K)  -- PyTorch Conv1d weight layout
    bias:   (C_out,)
    returns (N, C_out, T_out) with T_out = floor((T - 1) / stride) + 1
    """
    N, C_in, T = x.shape
    C_out, C_in_w, K = weight.shape
    assert C_in_w == C_in and T >= 1 and K >= 1 and stride >= 1 and dilation >= 1

    pad = (K - 1) * dilation
    T_out = (T - 1) // stride + 1

    # Fused weight layout: column index = k * C_eff + c.
    w2 = jnp.transpose(weight, (0, 2, 1)).reshape(C_out, K * C_in)
    b2 = bias.reshape(C_out, 1).astype(jnp.float32)

    if stride == 1:
        # Fast path: x fed untouched, halo carried in-kernel.
        x_feed = x
        n_taps, d_eff, C_eff = K, dilation, C_in
    else:
        # Rarer strided path: gather the K taps host-side once -> 1-tap conv.
        x_pad = jnp.pad(x, ((0, 0), (0, 0), (pad, 0)))
        stop = stride * (T_out - 1) + 1
        cols = [x_pad[:, :, k * dilation:k * dilation + stop:stride]
                for k in range(K)]
        x_feed = jnp.concatenate(cols, axis=1)               # (N, K*C_in, T_out)
        n_taps, d_eff, C_eff = 1, 0, K * C_in

    pad_eff = (n_taps - 1) * d_eff
    itemsize = jnp.dtype(x_feed.dtype).itemsize

    # Time tile: as large as a modest VMEM budget allows (2x-buffered in+out
    # blocks + halo scratch), multiple of 128 lanes, or the full extent.
    per_col = itemsize * (3 * C_eff + 2 * C_out)
    tt = min(int(time_tile), max(128, int(vmem_block_budget) // per_col))
    tt = max(128, tt // 128 * 128)
    if pad_eff:
        tt = max(tt, _round_up(pad_eff, 128))
    if T_out <= tt:
        tt = T_out                         # single full-extent tile (allowed)
    n_t = -(-T_out // tt)
    head = _round_up(pad_eff, 128) if pad_eff else 0

    # MXU only pays off once the contraction is non-trivial.
    use_mxu = (C_out * n_taps * C_eff >= 2048) or (n_taps * C_eff > 32)

    if pad_eff:
        kernel = functools.partial(_halo_kernel, n_taps=n_taps, dil=d_eff,
                                   head=head, tt=tt, use_mxu=use_mxu)
        scratch = [pltpu.VMEM((C_eff, head + tt), x_feed.dtype)]
        # Time axis must run in order (halo carry); batch stays parallel.
        dim_sem = ("parallel", "arbitrary")
    else:
        kernel = functools.partial(_nohalo_kernel, tt=tt, use_mxu=use_mxu)
        scratch = []
        dim_sem = ("parallel", "parallel")

    out = pl.pallas_call(
        kernel,
        out_shape=jax.ShapeDtypeStruct((N, C_out, T_out), x.dtype),
        grid_spec=pltpu.PrefetchScalarGridSpec(
            num_scalar_prefetch=0,
            grid=(N, n_t),
            in_specs=[
                pl.BlockSpec((1, C_eff, tt), lambda n, m: (n, 0, m)),
                pl.BlockSpec((C_out, K * C_in), lambda n, m: (0, 0)),
                pl.BlockSpec((C_out, 1), lambda n, m: (0, 0)),
            ],
            out_specs=pl.BlockSpec((1, C_out, tt), lambda n, m: (n, 0, m)),
            scratch_shapes=scratch,
        ),
        compiler_params=pltpu.CompilerParams(
            dimension_semantics=dim_sem,
            # Derived need is well under 16 MiB thanks to the tile budget;
            # 32 MiB is within every generation's scoped/physical limits.
            vmem_limit_bytes=32 * 1024 * 1024,
        ),
    )(x_feed, w2, b2)
    return out


def _ref_causal_conv(x, weight, bias, stride, dilation):
    K = weight.shape[2]
    pad = (K - 1) * dilation
    y = jax.lax.conv_general_dilated(
        jnp.pad(x, ((0, 0), (0, 0), (pad, 0))),
        weight,
        window_strides=(stride,),
        padding="VALID",
        rhs_dilation=(dilation,),
        dimension_numbers=("NCH", "OIH", "NCH"),
    )
    return y + bias[None, :, None]


if __name__ == "__main__":
    key = jax.random.PRNGKey(0)

    def run_case(case_id, *, N, d_in, d_out, K, stride, dilation, T,
                 time_tile=8192, dtype=jnp.float32, tol=1e-4):
        kx, kw, kb = jax.random.split(jax.random.fold_in(key, case_id), 3)
        x = jax.random.normal(kx, (N, d_in, T), dtype=jnp.float32).astype(dtype)
        w = (jax.random.normal(kw, (d_out, d_in, K), dtype=jnp.float32)
             * 0.1).astype(dtype)
        b = (jax.random.normal(kb, (d_out,), dtype=jnp.float32) * 0.1).astype(dtype)

        out = causal_conv1d(x, w, b, stride=stride, dilation=dilation,
                            time_tile=time_tile)
        out = jax.block_until_ready(out)

        ref = _ref_causal_conv(x.astype(jnp.float32), w.astype(jnp.float32),
                               b.astype(jnp.float32), stride, dilation)
        assert out.shape == ref.shape, (out.shape, ref.shape)
        assert out.dtype == dtype, out.dtype
        err = float(jnp.max(jnp.abs(out.astype(jnp.float32) - ref)))
        assert err <= tol, (case_id, err)

    # Primary config: CausalConv1d(4, 8, kernel_size=3, stride=1, dilation=2).
    run_case(0, N=2, d_in=4, d_out=8, K=3, stride=1, dilation=2, T=16)
    # Multi-tile time axis: exercises the in-kernel halo carry + ragged last tile.
    run_case(1, N=2, d_in=4, d_out=8, K=3, stride=1, dilation=2, T=1000,
             time_tile=128)
    # Module default kernel_size=1 (pointwise, no halo).
    run_case(2, N=2, d_in=4, d_out=8, K=1, stride=1, dilation=1, T=16)
    # Strided variant (host-side tap gather -> 1-tap kernel).
    run_case(3, N=2, d_in=4, d_out=8, K=3, stride=2, dilation=1, T=16)
    # bf16 I/O (f32 math in-kernel); also tests K=5 halo carry + ragged tail.
    run_case(4, N=2, d_in=4, d_out=8, K=5, stride=1, dilation=1, T=300,
             time_tile=128, dtype=jnp.bfloat16, tol=3e-2)

    print("KERNEL_OK")
</pallas_src>

<mosaic_0001>
module attributes {stable_mosaic.version = 11 : i64} {
  func.func @_halo_kernel(%arg0: i32, %arg1: i32, %arg2: memref<1x4x16xf32, #tpu.memory_space<vmem>>, %arg3: memref<8x12xf32, #tpu.memory_space<vmem>>, %arg4: memref<8x1xf32, #tpu.memory_space<vmem>>, %arg5: memref<1x8x16xf32, #tpu.memory_space<vmem>>, %arg6: memref<4x144xf32, #tpu.memory_space<vmem>>) attributes {dimension_semantics = [#tpu.dimension_semantics<parallel>, #tpu.dimension_semantics<arbitrary>], iteration_bounds = array<i64: 2, 1>, scalar_prefetch = 0 : i64, scratch_operands = 1 : i64, tpu.core_type = #tpu.core_type<tc>, window_params = [{transform_indices = @transform_0, window_bounds = array<i64: 1, 4, 16>}, {pipeline_mode = #tpu.pipeline_mode<synchronous>, transform_indices = @transform_1, window_bounds = array<i64: 8, 12>}, {pipeline_mode = #tpu.pipeline_mode<synchronous>, transform_indices = @transform_2, window_bounds = array<i64: 8, 1>}, {transform_indices = @transform_3, window_bounds = array<i64: 1, 8, 16>}]} {
    %c0_i32 = arith.constant 0 : i32
    %0 = arith.cmpi eq, %arg1, %c0_i32 : i32
    %1 = arith.extui %0 : i1 to i32
    %c0_i32_0 = arith.constant 0 : i32
    %2 = arith.cmpi ne, %1, %c0_i32_0 : i32
    scf.if %2 {
      %cst = arith.constant 0.000000e+00 : f32
      %88 = vector.broadcast %cst : f32 to vector<4x128xf32>
      %c0_46 = arith.constant 0 : index
      %c0_47 = arith.constant 0 : index
      %89 = vector.load %arg6[%c0_46, %c0_47] : memref<4x144xf32, #tpu.memory_space<vmem>>, vector<4x128xf32>
      tpu.vector_store %arg6[%c0_46, %c0_47], %88 {strides = array<i32>} : memref<4x144xf32, #tpu.memory_space<vmem>>, vector<4x128xf32>,
    } else {
    }
    %c0 = arith.constant 0 : index
    %c0_1 = arith.constant 0 : index
    %c0_2 = arith.constant 0 : index
    %3 = vector.load %arg2[%c0, %c0_1, %c0_2] : memref<1x4x16xf32, #tpu.memory_space<vmem>>, vector<1x4x16xf32>
    %4 = vector.shape_cast %3 : vector<1x4x16xf32> to vector<4x16xf32>
    %c0_3 = arith.constant 0 : index
    %c128 = arith.constant 128 : index
    %5 = vector.load %arg6[%c0_3, %c128] : memref<4x144xf32, #tpu.memory_space<vmem>>, vector<4x16xf32>
    tpu.vector_store %arg6[%c0_3, %c128], %4 {strides = array<i32>} : memref<4x144xf32, #tpu.memory_space<vmem>>, vector<4x16xf32>,
    %c0_4 = arith.constant 0 : index
    %c0_5 = arith.constant 0 : index
    %6 = vector.load %arg4[%c0_4, %c0_5] : memref<8x1xf32, #tpu.memory_space<vmem>>, vector<8x1xf32>
    %7 = vector.shape_cast %6 : vector<8x1xf32> to vector<8x1xf32>
    %8 = vector.broadcast %7 : vector<8x1xf32> to vector<8x16xf32>
    %c0_6 = arith.constant 0 : index
    %c124 = arith.constant 124 : index
    %9 = vector.load %arg6[%c0_6, %c124] : memref<4x144xf32, #tpu.memory_space<vmem>>, vector<1x16xf32>
    %c0_7 = arith.constant 0 : index
    %c0_8 = arith.constant 0 : index
    %10 = vector.load %arg3[%c0_7, %c0_8] : memref<8x12xf32, #tpu.memory_space<vmem>>, vector<8x1xf32>
    %11 = vector.broadcast %10 : vector<8x1xf32> to vector<8x16xf32>
    %12 = vector.broadcast %9 : vector<1x16xf32> to vector<8x16xf32>
    %13 = arith.mulf %11, %12 : vector<8x16xf32>
    %14 = arith.addf %8, %13 : vector<8x16xf32>
    %c1 = arith.constant 1 : index
    %c124_9 = arith.constant 124 : index
    %15 = vector.load %arg6[%c1, %c124_9] : memref<4x144xf32, #tpu.memory_space<vmem>>, vector<1x16xf32>
    %c0_10 = arith.constant 0 : index
    %c1_11 = arith.constant 1 : index
    %16 = vector.load %arg3[%c0_10, %c1_11] : memref<8x12xf32, #tpu.memory_space<vmem>>, vector<8x1xf32>
    %17 = vector.broadcast %16 : vector<8x1xf32> to vector<8x16xf32>
    %18 = vector.broadcast %15 : vector<1x16xf32> to vector<8x16xf32>
    %19 = arith.mulf %17, %18 : vector<8x16xf32>
    %20 = arith.addf %14, %19 : vector<8x16xf32>
    %c2 = arith.constant 2 : index
    %c124_12 = arith.constant 124 : index
    %21 = vector.load %arg6[%c2, %c124_12] : memref<4x144xf32, #tpu.memory_space<vmem>>, vector<1x16xf32>
    %c0_13 = arith.constant 0 : index
    %c2_14 = arith.constant 2 : index
    %22 = vector.load %arg3[%c0_13, %c2_14] : memref<8x12xf32, #tpu.memory_space<vmem>>, vector<8x1xf32>
    %23 = vector.broadcast %22 : vector<8x1xf32> to vector<8x16xf32>
    %24 = vector.broadcast %21 : vector<1x16xf32> to vector<8x16xf32>
    %25 = arith.mulf %23, %24 : vector<8x16xf32>
    %26 = arith.addf %20, %25 : vector<8x16xf32>
    %c3 = arith.constant 3 : index
    %c124_15 = arith.constant 124 : index
    %27 = vector.load %arg6[%c3, %c124_15] : memref<4x144xf32, #tpu.memory_space<vmem>>, vector<1x16xf32>
    %c0_16 = arith.constant 0 : index
    %c3_17 = arith.constant 3 : index
    %28 = vector.load %arg3[%c0_16, %c3_17] : memref<8x12xf32, #tpu.memory_space<vmem>>, vector<8x1xf32>
    %29 = vector.broadcast %28 : vector<8x1xf32> to vector<8x16xf32>
    %30 = vector.broadcast %27 : vector<1x16xf32> to vector<8x16xf32>
    %31 = arith.mulf %29, %30 : vector<8x16xf32>
    %32 = arith.addf %26, %31 : vector<8x16xf32>
    %c0_18 = arith.constant 0 : index
    %c126 = arith.constant 126 : index
    %33 = vector.load %arg6[%c0_18, %c126] : memref<4x144xf32, #tpu.memory_space<vmem>>, vector<1x16xf32>
    %c0_19 = arith.constant 0 : index
    %c4 = arith.constant 4 : index
    %34 = vector.load %arg3[%c0_19, %c4] : memref<8x12xf32, #tpu.memory_space<vmem>>, vector<8x1xf32>
    %35 = vector.broadcast %34 : vector<8x1xf32> to vector<8x16xf32>
    %36 = vector.broadcast %33 : vector<1x16xf32> to vector<8x16xf32>
    %37 = arith.mulf %35, %36 : vector<8x16xf32>
    %38 = arith.addf %32, %37 : vector<8x16xf32>
    %c1_20 = arith.constant 1 : index
    %c126_21 = arith.constant 126 : index
    %39 = vector.load %arg6[%c1_20, %c126_21] : memref<4x144xf32, #tpu.memory_space<vmem>>, vector<1x16xf32>
    %c0_22 = arith.constant 0 : index
    %c5 = arith.constant 5 : index
    %40 = vector.load %arg3[%c0_22, %c5] : memref<8x12xf32, #tpu.memory_space<vmem>>, vector<8x1xf32>
    %41 = vector.broadcast %40 : vector<8x1xf32> to vector<8x16xf32>
    %42 = vector.broadcast %39 : vector<1x16xf32> to vector<8x16xf32>
    %43 = arith.mulf %41, %42 : vector<8x16xf32>
    %44 = arith.addf %38, %43 : vector<8x16xf32>
    %c2_23 = arith.constant 2 : index
    %c126_24 = arith.constant 126 : index
    %45 = vector.load %arg6[%c2_23, %c126_24] : memref<4x144xf32, #tpu.memory_space<vmem>>, vector<1x16xf32>
    %c0_25 = arith.constant 0 : index
    %c6 = arith.constant 6 : index
    %46 = vector.load %arg3[%c0_25, %c6] : memref<8x12xf32, #tpu.memory_space<vmem>>, vector<8x1xf32>
    %47 = vector.broadcast %46 : vector<8x1xf32> to vector<8x16xf32>
    %48 = vector.broadcast %45 : vector<1x16xf32> to vector<8x16xf32>
    %49 = arith.mulf %47, %48 : vector<8x16xf32>
    %50 = arith.addf %44, %49 : vector<8x16xf32>
    %c3_26 = arith.constant 3 : index
    %c126_27 = arith.constant 126 : index
    %51 = vector.load %arg6[%c3_26, %c126_27] : memref<4x144xf32, #tpu.memory_space<vmem>>, vector<1x16xf32>
    %c0_28 = arith.constant 0 : index
    %c7 = arith.constant 7 : index
    %52 = vector.load %arg3[%c0_28, %c7] : memref<8x12xf32, #tpu.memory_space<vmem>>, vector<8x1xf32>
    %53 = vector.broadcast %52 : vector<8x1xf32> to vector<8x16xf32>
    %54 = vector.broadcast %51 : vector<1x16xf32> to vector<8x16xf32>
    %55 = arith.mulf %53, %54 : vector<8x16xf32>
    %56 = arith.addf %50, %55 : vector<8x16xf32>
    %c0_29 = arith.constant 0 : index
    %c128_30 = arith.constant 128 : index
    %57 = vector.load %arg6[%c0_29, %c128_30] : memref<4x144xf32, #tpu.memory_space<vmem>>, vector<1x16xf32>
    %c0_31 = arith.constant 0 : index
    %c8 = arith.constant 8 : index
    %58 = vector.load %arg3[%c0_31, %c8] : memref<8x12xf32, #tpu.memory_space<vmem>>, vector<8x1xf32>
    %59 = vector.broadcast %58 : vector<8x1xf32> to vector<8x16xf32>
    %60 = vector.broadcast %57 : vector<1x16xf32> to vector<8x16xf32>
    %61 = arith.mulf %59, %60 : vector<8x16xf32>
    %62 = arith.addf %56, %61 : vector<8x16xf32>
    %c1_32 = arith.constant 1 : index
    %c128_33 = arith.constant 128 : index
    %63 = vector.load %arg6[%c1_32, %c128_33] : memref<4x144xf32, #tpu.memory_space<vmem>>, vector<1x16xf32>
    %c0_34 = arith.constant 0 : index
    %c9 = arith.constant 9 : index
    %64 = vector.load %arg3[%c0_34, %c9] : memref<8x12xf32, #tpu.memory_space<vmem>>, vector<8x1xf32>
    %65 = vector.broadcast %64 : vector<8x1xf32> to vector<8x16xf32>
    %66 = vector.broadcast %63 : vector<1x16xf32> to vector<8x16xf32>
    %67 = arith.mulf %65, %66 : vector<8x16xf32>
    %68 = arith.addf %62, %67 : vector<8x16xf32>
    %c2_35 = arith.constant 2 : index
    %c128_36 = arith.constant 128 : index
    %69 = vector.load %arg6[%c2_35, %c128_36] : memref<4x144xf32, #tpu.memory_space<vmem>>, vector<1x16xf32>
    %c0_37 = arith.constant 0 : index
    %c10 = arith.constant 10 : index
    %70 = vector.load %arg3[%c0_37, %c10] : memref<8x12xf32, #tpu.memory_space<vmem>>, vector<8x1xf32>
    %71 = vector.broadcast %70 : vector<8x1xf32> to vector<8x16xf32>
    %72 = vector.broadcast %69 : vector<1x16xf32> to vector<8x16xf32>
    %73 = arith.mulf %71, %72 : vector<8x16xf32>
    %74 = arith.addf %68, %73 : vector<8x16xf32>
    %c3_38 = arith.constant 3 : index
    %c128_39 = arith.constant 128 : index
    %75 = vector.load %arg6[%c3_38, %c128_39] : memref<4x144xf32, #tpu.memory_space<vmem>>, vector<1x16xf32>
    %c0_40 = arith.constant 0 : index
    %c11 = arith.constant 11 : index
    %76 = vector.load %arg3[%c0_40, %c11] : memref<8x12xf32, #tpu.memory_space<vmem>>, vector<8x1xf32>
    %77 = vector.broadcast %76 : vector<8x1xf32> to vector<8x16xf32>
    %78 = vector.broadcast %75 : vector<1x16xf32> to vector<8x16xf32>
    %79 = arith.mulf %77, %78 : vector<8x16xf32>
    %80 = arith.addf %74, %79 : vector<8x16xf32>
    %c0_41 = arith.constant 0 : index
    %c0_42 = arith.constant 0 : index
    %c0_43 = arith.constant 0 : index
    %81 = vector.load %arg5[%c0_41, %c0_42, %c0_43] : memref<1x8x16xf32, #tpu.memory_space<vmem>>, vector<1x8x16xf32>
    %82 = vector.shape_cast %81 : vector<1x8x16xf32> to vector<8x16xf32>
    %83 = vector.shape_cast %80 : vector<8x16xf32> to vector<1x8x16xf32>
    tpu.vector_store %arg5[%c0_41, %c0_42, %c0_43], %83 {strides = array<i32>} : memref<1x8x16xf32, #tpu.memory_space<vmem>>, vector<1x8x16xf32>,
    %c1_i32 = arith.constant 1 : i32
    %84 = arith.addi %arg1, %c1_i32 : i32
    %c1_i32_44 = arith.constant 1 : i32
    %85 = arith.cmpi slt, %84, %c1_i32_44 : i32
    %86 = arith.extui %85 : i1 to i32
    %c0_i32_45 = arith.constant 0 : i32
    %87 = arith.cmpi ne, %86, %c0_i32_45 : i32
    scf.if %87 {
      %c0_46 = arith.constant 0 : index
      %c140 = arith.constant 140 : index
      %88 = vector.load %arg6[%c0_46, %c140] : memref<4x144xf32, #tpu.memory_space<vmem>>, vector<4x4xf32>
      %c0_47 = arith.constant 0 : index
      %c124_48 = arith.constant 124 : index
      %89 = vector.load %arg6[%c0_47, %c124_48] : memref<4x144xf32, #tpu.memory_space<vmem>>, vector<4x4xf32>
      tpu.vector_store %arg6[%c0_47, %c124_48], %88 {strides = array<i32>} : memref<4x144xf32, #tpu.memory_space<vmem>>, vector<4x4xf32>,
    } else {
    }
    return
  }
  func.func @transform_0(%arg0: i32, %arg1: i32) -> (i32, i32, i32) {
    %c0_i32 = arith.constant 0 : i32
    %c0_i32_0 = arith.constant 0 : i32
    return %arg0, %c0_i32, %arg1 : i32, i32, i32
  }
  func.func @transform_1(%arg0: i32, %arg1: i32) -> (i32, i32) {
    %c0_i32 = arith.constant 0 : i32
    %c0_i32_0 = arith.constant 0 : i32
    %c0_i32_1 = arith.constant 0 : i32
    return %c0_i32, %c0_i32_0 : i32, i32
  }
  func.func @transform_2(%arg0: i32, %arg1: i32) -> (i32, i32) {
    %c0_i32 = arith.constant 0 : i32
    %c0_i32_0 = arith.constant 0 : i32
    %c0_i32_1 = arith.constant 0 : i32
    return %c0_i32, %c0_i32_0 : i32, i32
  }
  func.func @transform_3(%arg0: i32, %arg1: i32) -> (i32, i32, i32) {
    %c0_i32 = arith.constant 0 : i32
    %c0_i32_0 = arith.constant 0 : i32
    return %arg0, %c0_i32, %arg1 : i32, i32, i32
  }
}

</mosaic_0001>

<bundles_post_ra>
// kernel: tpu_custom_call.1
= control target key start
LH: loop header
LB: loop body
LE: loop exit
PB: predicated region body
PF: predicated region fallthrough
CT: control target
= control target key end

     0   :  { %8 = vsyncpa [#allocation4], 0  ;;  %s897_s0 = inlined_call_operand.vmem [shape: f32[2,4,16], index: 0, kind: input, shape index: {}]   ;;  %s898_s1 = inlined_call_operand.hbm [shape: f32[8,12], index: 1, kind: input, shape index: {}]   ;;  %s899_s2 = inlined_call_operand.vmem [shape: f32[8,1], index: 2, kind: input, shape index: {}]   ;;  %s900_s3 = inlined_call_operand.hbm [shape: f32[2,8,16], index: 3, kind: output, shape index: {}]  }
   0x1   :  { %9 = vsyncpa [#allocation5], 0 }
   0x2   :  { %11 = vsyncpa [#allocation5 + $0x1], 0  ;;  %s794_s12 = smov 0   ;;  %s796_s13 = smov 0  }
   0x3   :  { %s798_s14 = smov 0   ;;  %s800_s15 = smov 0  }
   0x4   :  { %s802_s16 = smov 0   ;;  %s804_s17 = smov 0  }
   0x5 LB: > { %s530_s18 = sadd.s32 4294967295, %s755_s17   ;;  %s531_s19 = sadd.s32 4294967294, %s755_s17   ;;  %s755_s17 = sphi %s804_s17, %s17_s17   ;;  %s751_s16 = sphi %s802_s16, %s907_s16   ;;  %s747_s15 = sphi %s800_s15, %s906_s15   ;;  %s743_s14 = sphi %s798_s14, %s905_s14   ;;  %s739_s13 = sphi %s796_s13, %s904_s13   ;;  %s735_s12 = sphi %s794_s12, %s903_s12  }
   0x6   : > { %s29_s20 = sadd.s32 1, %s751_s16  ;;  %s108_s21 = sadd.s32 1, %s743_s14 }
   0x7   : > { %p31_p0 = scmp.ge.s32.totalorder %s29_s20, 2  ;;  %p118_p1 = scmp.ne.s32.totalorder %s743_s14, %s739_s13 }
   0x8   : > { %p119_p2 = scmp.eq.s32.totalorder %s530_s18, 1  ;;  %p124_p3 = scmp.ne.s32.totalorder %s739_s13, %s735_s12 }
   0x9   : > { %s909_s20 = smov (%p31_p0, %s29_s20), 0  ;;  %p125_p5 = scmp.eq.s32.totalorder %s531_s19, 1 }
   0xa   : > { %p834_p4 = por %p119_p2, %p118_p1  ;;  %s103_s23 = ssub.s32 %s751_s16, %s909_s20 }
   0xb   : > { %p532_p6 = scmp.ge.s32.totalorder %s755_s17, 1  ;;  %p106_p7 = scmp.eq.s32.totalorder %s103_s23, 0 }
   0xc   : > { %p841_p8 = por %p125_p5, %p124_p3  ;;  %p132_p9 = scmp.lt.s32.totalorder %s755_s17, 3 }
   0xd   : > { %s847_s25 = scalar_select %p106_p7, %s743_s14, %s108_s21  }
   0xe   : > { %p133_p10 = pnand %p532_p6, %p132_p9  ;;  %p557_p11 = scmp.eq.s32.totalorder %s530_s18, 0 }
   0xf   : > { %s144_s28 = sshll.u32 %s898_s1, 4  ;;  %s757_s29 = smov [#allocation3]   ;;  %s145_s28 = int_to_ptr.hbm [resolvable:$true] %s144_s28 }
  0x10   : > { %p549_p12 = pneg %p133_p10  ;;  %s146_s30 = sshll.u32 %s757_s29, 4  ;;  %s147_s30 = int_to_ptr.vmem [resolvable:$true] %s146_s30 }
  0x11   : > { %172 = sbr.rel (%p133_p10) target bundleno = 407 (0x197), region = 32 }
  0x12   : > { %p550_p13 = pnand %p557_p11, %p549_p12 }
  0x14   : > { %552 = dma.hbm_to_vmem [thread:$0]  (!%p550_p13), %s145_s28, 128, %s147_s30, [#allocation4]  }
  0x16   : > { %726 = dma.done.wait (%p557_p11), [#allocation4], 128  }
  0x17   : > { %728 = vsyncadd (%p557_p11), [#allocation4], 4294967168  ;;  %v758_v0 = vmov 4   ;;  %v759_v1 = vmov 6   ;;  %v760_v2 = vmov 8   ;;  %v221_v3 = vld [vmem:[#allocation3] sm:$0xff] }
  0x18   : > { %625 = vset.pattern.permute.xlu0 %v758_v0  ;;  %627 = vset.pattern.permute.xlu1 %v759_v1  ;;  %v761_v4 = vmov 0.0   ;;  %v762_v5 = vmov 5   ;;  %v763_v6 = vmov 7   ;;  %v764_v7 = vmov 9   ;;  %v214_v11 = vld [vmem:[%s899_s2] sm:$0xff]  ;;  %p199_p0 = scmp.lt.s32.totalorder %s747_s15, 1 }
  0x19   : > { %629 = vset.pattern.permute.xlu2 %v760_v2  ;;  %287 = vperm.xlu0 %625, %v221_v3   ;;  %210 = vst [vmem:[#allocation2] sm:$0xf] %v761_v4  ;;  %v765_v8 = vmov 10   ;;  %v766_v9 = vmov 0   ;;  %v767_v10 = vmov 11   ;;  %v768_v12 = vmov 1  }
  0x1a   : > { %322 = vperm.xlu1 %627, %v221_v3   ;;  %357 = vperm.xlu2 %629, %v221_v3   ;;  %v769_v13 = vmov 2   ;;  %s200_s6 = scalar_select %p199_p0, %s747_s15, 1  ;;  %vm212_vm0 = vcmask 125952   ;;  %v770_v15 = vmov 3   ;;  %vm298_vm1 = vcmask 1031168  }
  0x1b   : > { %s771_s11 = smov 126   ;;  %s772_s18 = smov 124   ;;  %vm413_vm2 = vcmask 31744   ;;  %vm416_vm3 = vcmask 130048  }
  0x1c   : > { %s538_s7 = sshll.u32 %s200_s6, 2  ;;  %s773_s19 = smov 4  }
  0x1d   : > { %s205_s10 = scalar_lea.vmem %s897_s0, %s538_s7  ;;  %s196_s21 = sand.u32 1, %s739_s13  }
  0x1e   : > { %v211_v14 = vld [vmem:[%s205_s10] sm:$0xf]  ;;  %s537_s23 = sshll.u32 %s196_s21, 3  ;;  %s540_s26 = sshll.u32 %s747_s15, 3 }
  0x1f   : > { %213 = vst.msk [vmem:[#allocation2 + $0x4] sm:$0xf] %vm212_vm0, %v211_v14  ;;  %s442_s29 = scalar_lea.hbm %s900_s3, %s540_s26  ;;  %s198_s30 = scalar_lea.vmem [#allocation6], %s537_s23 }
  0x20   : > { %s444_s4 = sshll.u32 %s198_s30, 4  ;;  %s446_s5 = sshll.u32 %s442_s29, 4  ;;  %s445_s4 = int_to_ptr.vmem [resolvable:$true] %s444_s4  ;;  %s447_s5 = int_to_ptr.hbm [resolvable:$true] %s446_s5 }
  0x21   : > { %626 = vset.pattern.permute.xlu0 %v762_v5  ;;  %s431_s6 = scalar_lea.sflag [#allocation5], %s196_s21  ;;  %s687_s7 = sshra.s32 %s447_s5, 4  ;;  %s688_s7 = int_to_ptr.hbm [resolvable:$true] %s687_s7 }
  0x22   : > { %628 = vset.pattern.permute.xlu1 %v763_v6  ;;  %305 = vperm.xlu0 %626, %v221_v3   ;;  %s689_s15 = scalar_lea.hbm %s688_s7, 8  ;;  %s693_s10 = scalar_lea.hbm %s900_s3, 16 }
  0x23   : > { %339 = vperm.xlu1 %628, %v221_v3   ;;  %630 = vset.pattern.permute.xlu2 %v764_v7  ;;  %p690_p1 = scmp.ne.s32.totalorder %s688_s7, %s689_s15  ;;  %p694_p5 = scmp.lt.s32.totalorder %s688_s7, %s900_s3 }
  0x24   : > { %370 = vperm.xlu2 %630, %v221_v3   ;;  %p695_p6 = scmp.lt.s32.totalorder %s693_s10, %s689_s15 }
  0x25   : > { %p691_p2 = pnand %p690_p1, %p834_p4 }
  0x26   : > { %v220_v16 = vld [vmem:[#allocation2] sm:$0x11]  ;;  %v254_v19 = vld [vmem:[#allocation2 + $0x2] sm:$0x11]  ;;  %v238_v23 = vld [vmem:[#allocation2 + $0x1] sm:$0x11]  ;;  %p696_p7 = por %p695_p6, %p694_p5 }
  0x27   : > { %v228_v17 = vperm.slane %v220_v16, 0  ;;  %v229_v18 = vperm.slane %v220_v16, 4  ;;  %v260_v22 = vperm.slane %v254_v19, 0  ;;  %v244_v28 = vperm.slane %v238_v23, 0  ;;  %v270_v31 = vld [vmem:[#allocation2 + $0x3] sm:$0x11]  ;;  %p692_p3 = pneg %p691_p2 }
  0x28   : > { %v245_v29 = vperm.slane %v238_v23, 4  ;;  %v277_v35 = vperm.slane %v270_v31, 4  ;;  %v276_v36 = vperm.slane %v270_v31, 0  ;;  %v261_v38 = vperm.slane %v254_v19, 4  ;;  %v641_v49 = vld [vmem:[#allocation2 + $0x6] ss:$0 sm:$0xff] }
  0x29   : > { %v232_v20 = vperm.slane %v228_v17, 0  ;;  %v233_v21 = vperm.slane %v229_v18, 0  ;;  %v264_v30 = vperm.slane %v260_v22, 0  ;;  %v248_v32 = vperm.slane %v244_v28, 0  ;;  %v640_v50 = vld [vmem:[#allocation2 + $0x5] ss:$0 sm:$0xff]  ;;  %p697_p9 = pnand %p696_p7, %p692_p3 }
  0x2a   : > { %633 = vset.pattern.permute.xlu0 %v766_v9  ;;  %v249_v33 = vperm.slane %v245_v29, 0  ;;  %v281_v42 = vperm.slane %v277_v35, 0  ;;  %v280_v44 = vperm.slane %v276_v36, 0  ;;  %v265_v45 = vperm.slane %v261_v38, 0  ;;  %v639_v53 = vld [vmem:[#allocation2 + $0x4] ss:$0 sm:$0xff] }
  0x2b   : > { %631 = vset.pattern.permute.xlu1 %v765_v8  ;;  %224 = vperm.xlu0 %633, %v221_v3   ;;  %v642_v57 = vld [vmem:[#allocation2 + $0x7] ss:$0 sm:$0xff] }
  0x2c   : > { %383 = vperm.xlu1 %631, %v221_v3   ;;  %632 = vset.pattern.permute.xlu2 %v767_v10 }
  0x2d   : > { %396 = vperm.xlu2 %632, %v221_v3  }
  0x33   : > { %638 = vset.pattern.permute.xlu0 %v767_v10 }
  0x34   : > { %634 = vset.pattern.permute.xlu1 %v766_v9 }
  0x35   : > { %217 = vperm.xlu1 %634, %v214_v11   ;;  %635 = vset.pattern.permute.xlu2 %v768_v12 }
  0x36   : > { %240 = vperm.xlu2 %635, %v221_v3  }
  0x3d   : > { %636 = vset.pattern.permute.xlu1 %v769_v13 }
  0x3e   : > { %256 = vperm.xlu1 %636, %v221_v3   ;;  %637 = vset.pattern.permute.xlu2 %v770_v15 }
  0x3f   : > { %272 = vperm.xlu2 %637, %v221_v3  }
  0x74   : > { %v358_v41 = vpop.permute.xlu2 %357 }
  0x75   : > { %v361_v56 = vmul.f32 %v639_v53, %v358_v41 }
  0x7e   : > { %v371_v52 = vpop.permute.xlu2 %370 }
  0x7f   : > { %v374_v55 = vmul.f32 %v640_v50, %v371_v52 }
  0x87   : > { %v397_v58 = vpop.permute.xlu2 %396 }
  0x88   : > { %v400_v59 = vmul.f32 %v642_v57, %v397_v58 }
  0x8b   : > { %v288_v24 = vpop.permute.xlu0 %287 }
  0x8c   : > { %v290_v25 = vmul.f32 %v288_v24, %v232_v20  ;;  %v291_v26 = vmul.f32 %v288_v24, %v233_v21  ;;  %v323_v27 = vpop.permute.xlu1 %322 }
  0x8d   : > { %v325_v34 = vmul.f32 %v323_v27, %v264_v30  ;;  %v326_v48 = vmul.f32 %v323_v27, %v265_v45 }
  0x8e   : > { %296 = vrot.lane.b32.xlu1 %v291_v26, %s771_s11  ;;  %294 = vrot.lane.b32.xlu0 %v290_v25, %s771_s11 }
  0x90   : > { %v241_v0 = vpop.permute.xlu2 %240 }
  0x91   : > { %v250_v1 = vmul.f32 %v248_v32, %v241_v0  ;;  %v251_v2 = vmul.f32 %v249_v33, %v241_v0 }
  0x94   : > { %v306_v37 = vpop.permute.xlu0 %305 }
  0x95   : > { %v308_v39 = vmul.f32 %v306_v37, %v248_v32  ;;  %v309_v40 = vmul.f32 %v306_v37, %v249_v33  ;;  %v340_v43 = vpop.permute.xlu1 %339 }
  0x96   : > { %329 = vrot.lane.b32.xlu1 %v325_v34, %s771_s11  ;;  %v343_v46 = vmul.f32 %v340_v43, %v281_v42  ;;  %v342_v47 = vmul.f32 %v340_v43, %v280_v44 }
  0x97   : > { %312 = vrot.lane.b32.xlu2 %v308_v39, %s771_s11  ;;  %314 = vrot.lane.b32.xlu0 %v309_v40, %s771_s11 }
  0x99   : > { %v273_v10 = vpop.permute.xlu2 %272 }
  0x9a   : > { %v282_v11 = vmul.f32 %v280_v44, %v273_v10  ;;  %v283_v12 = vmul.f32 %v281_v42, %v273_v10 }
  0x9d   : > { %v225_v60 = vpop.permute.xlu0 %224 }
  0x9e   : > { %348 = vrot.lane.b32.xlu1 %v343_v46, %s771_s11  ;;  %v384_v51 = vpop.permute.xlu1 %383  ;;  %v234_v62 = vmul.f32 %v232_v20, %v225_v60  ;;  %v235_v63 = vmul.f32 %v233_v21, %v225_v60 }
  0x9f   : > { %331 = vrot.lane.b32.xlu2 %v326_v48, %s771_s11  ;;  %346 = vrot.lane.b32.xlu0 %v342_v47, %s771_s11  ;;  %v387_v54 = vmul.f32 %v641_v49, %v384_v51 }
  0xa6   : > { %389 = vrot.lane.b32.xlu1 %v387_v54, %s772_s18 }
  0xa7   : > { %363 = vrot.lane.b32.xlu2 %v361_v56, %s772_s18  ;;  %376 = vrot.lane.b32.xlu0 %v374_v55, %s772_s18  ;;  %v218_v61 = vpop.permute.xlu1 %217 }
  0xa8   : > { %v236_v3 = vadd.f32 %v234_v62, %v218_v61  ;;  %v237_v4 = vadd.f32 %v235_v63, %v218_v61 }
  0xaa   : > { %v252_v6 = vadd.f32 %v250_v1, %v236_v3  ;;  %v253_v7 = vadd.f32 %v251_v2, %v237_v4 }
  0xaf   : > { %402 = vrot.lane.b32.xlu2 %v400_v59, %s772_s18 }
  0xb0   : > { %v257_v5 = vpop.permute.xlu1 %256 }
  0xb1   : > { %v266_v8 = vmul.f32 %v264_v30, %v257_v5  ;;  %v267_v9 = vmul.f32 %v265_v45, %v257_v5 }
  0xb3   : > { %v268_v13 = vadd.f32 %v266_v8, %v252_v6  ;;  %v269_v14 = vadd.f32 %v267_v9, %v253_v7 }
  0xb5   : > { %v285_v15 = vadd.f32 %v283_v12, %v269_v14  ;;  %v284_v16 = vadd.f32 %v282_v11, %v268_v13 }
  0xf1   : > { %v313_v17 = vpop.permute.xlu2 %312 }
  0xf9   : > { %v332_v21 = vpop.permute.xlu2 %331 }
 0x100   : > { %v297_v18 = vpop.permute.xlu1 %296  ;;  %v295_v19 = vpop.permute.xlu0 %294 }
 0x101   : > { %v299_v22 = vsel %vm298_vm1, %v295_v19, %v297_v18  ;;  %v303_v25 = vadd.f32 %v297_v18, %v285_v15  ;;  %v364_v35 = vpop.permute.xlu2 %363 }
 0x102   : > { %v302_v26 = vadd.f32 %v299_v22, %v284_v16 }
 0x108   : > { %v330_v20 = vpop.permute.xlu1 %329 }
 0x109   : > { %v315_v23 = vpop.permute.xlu0 %314  ;;  %v333_v30 = vsel %vm298_vm1, %v330_v20, %v332_v21  ;;  %v403_v44 = vpop.permute.xlu2 %402 }
 0x10a   : > { %v316_v24 = vsel %vm298_vm1, %v313_v17, %v315_v23  ;;  %v320_v28 = vadd.f32 %v315_v23, %v303_v25 }
 0x10b   : > { %v319_v27 = vadd.f32 %v316_v24, %v302_v26 }
 0x10c   : > { %v337_v32 = vadd.f32 %v332_v21, %v320_v28 }
 0x10d   : > { %v336_v33 = vadd.f32 %v333_v30, %v319_v27 }
 0x110   : > { %v349_v29 = vpop.permute.xlu1 %348 }
 0x111   : > { %v347_v31 = vpop.permute.xlu0 %346  ;;  %v354_v36 = vadd.f32 %v349_v29, %v337_v32 }
 0x112   : > { %v350_v34 = vsel %vm298_vm1, %v347_v31, %v349_v29 }
 0x113   : > { %v353_v37 = vadd.f32 %v350_v34, %v336_v33  ;;  %v367_v38 = vadd.f32 %v364_v35, %v354_v36 }
 0x115   : > { %v366_v39 = vadd.f32 %v364_v35, %v353_v37 }
 0x118   : > { %v390_v41 = vpop.permute.xlu1 %389 }
 0x119   : > { %v377_v40 = vpop.permute.xlu0 %376 }
 0x11a   : > { %v379_v42 = vadd.f32 %v377_v40, %v366_v39  ;;  %v380_v43 = vadd.f32 %v377_v40, %v367_v38 }
 0x11c   : > { %v392_v45 = vadd.f32 %v390_v41, %v379_v42  ;;  %v393_v46 = vadd.f32 %v390_v41, %v380_v43 }
 0x11e   : > { %v405_v47 = vadd.f32 %v403_v44, %v392_v45  ;;  %v406_v48 = vadd.f32 %v403_v44, %v393_v46 }
 0x120   : > { %411 = vrot.lane.b32.xlu1 %v406_v48, %s773_s19  ;;  %409 = vrot.lane.b32.xlu0 %v405_v47, %s773_s19 }
 0x192   : > { %v412_v49 = vpop.permute.xlu1 %411  ;;  %v410_v50 = vpop.permute.xlu0 %409 }
 0x193   : > { %v414_v51 = vsel %vm413_vm2, %v410_v50, %v412_v49 }
 0x194   : > { %417 = vst.msk [vmem:[%s198_s30] sm:$0xff] %vm416_vm3, %v414_v51 }
 0x195   : > { %700 = shalt.err (!%p697_p9)
}
 0x196   : > { %547 = dma.vmem_to_hbm [thread:$0]  (%p834_p4), %s445_s4, 128, %s447_s5, %s431_s6  }
 0x197 PF: > { %p559_p10 = scmp.ge.s32.totalorder %s755_s17, 2  ;;  %s458_s19 = sand.u32 1, %s735_s12  }
 0x198   : > { %s459_s21 = scalar_lea.sflag [#allocation5], %s458_s19 }
 0x199   : > { %p554_p11 = pnand %p559_p10, %p841_p8 }
 0x19b   : > { %p555_p12 = pneg %p554_p11 }
 0x19d   : > { %730 = dma.done.wait (%p555_p12), %s459_s21, 128  }
 0x19e   : > { %732 = vsyncadd (%p555_p12), %s459_s21, 4294967168  ;;  %s17_s17 = sadd.s32 1, %s755_s17   ;;  %s903_s12 = smov %s739_s13 }
 0x19f   : > { %p14_p13 = scmp.ge.s32.totalorder %s17_s17, 4   ;;  %s904_s13 = smov %s743_s14 }
 0x1a0   : > { %s905_s14 = smov %s847_s25  ;;  %s906_s15 = smov %s751_s16 }
 0x1a1   : > { %s907_s16 = smov %s909_s20  ;;  %16 = sbr.rel (!%p14_p13) target bundleno = 5 (0x5), region = 80 }
 0x1a6   :  { %465 = vsyncpa [#allocation4], 1 }
 0x1a7   :  { %467 = vsyncpa [#allocation4 + $0x1], 1 }
 0x1a8   :  { %468 = vsyncpa [#allocation5], 1 }
 0x1a9   :  { %470 = vsyncpa [#allocation5 + $0x1], 1 }

</bundles_post_ra>
